<compile_context>
chip_gen: v7x
topology: tpu7x:2x2x1
jax: 0.10.0
libtpu: 0.0.40
codegen_flags: <defaults>
</compile_context>

<pallas_src>
import jax
import jax.numpy as jnp
from jax import lax
from jax.experimental import pallas as pl
from jax.experimental.pallas import tpu as pltpu

ROWS_PER_GROUP = 8  # batch rows packed onto the 8 sublanes of one vreg row


def covernet_loss_kernel(mem_ref, mem_sq_ref, tgt_ref, preds_ref,
                         loss_ref, idx_ref):
    # mem_ref:    (T*D, M)      constant lattice, modes on the 128-lane axis
    # mem_sq_ref: (T, M)        hoisted sum_d mem^2 (constant across batch)
    # tgt_ref:    (TB, T*D)     batch tile of targets, lane-dense
    # preds_ref:  (TB, M)       batch tile of logits, modes on lanes
    # loss_ref:   (8, TB//8)    per-row CE loss: rows on sublanes, groups on lanes
    # idx_ref:    (8, TB//8)    closest-mode index (float32), same layout
    T, M = mem_sq_ref.shape
    TD = mem_ref.shape[0]
    D = TD // T
    RG, n_groups = loss_ref.shape
    inv_T = jnp.float32(1.0 / T)

    # Hoisted iotas (JAX does not CSE broadcast_in_dim — keep out of the loop).
    mode_ids = lax.broadcasted_iota(jnp.int32, (RG, M), 1)          # (RG, M)
    group_ids = lax.broadcasted_iota(jnp.int32, (RG, n_groups), 1)  # (RG, n_grp)

    def group(gg, carry):
        loss_mat, idx_mat = carry
        r0 = pl.multiple_of(gg * RG, RG)
        tgt_g = tgt_ref[pl.ds(r0, RG), :].astype(jnp.float32)       # (RG, T*D)
        logits = preds_ref[pl.ds(r0, RG), :].astype(jnp.float32)    # (RG, M)

        # dist[r, m] = mean_t sqrt(||mem_t[:,m]||^2 + ||tgt[r,t,:]||^2
        #                          - 2 * sum_d mem[t,d,m] * tgt[r,t,d])
        dist = jnp.zeros((RG, M), jnp.float32)
        for t in range(T):                       # static: T is small
            msq_t = mem_sq_ref[pl.ds(t, 1), :].astype(jnp.float32)  # (1, M)
            cross = jnp.zeros((RG, M), jnp.float32)
            tsq = jnp.zeros((RG, 1), jnp.float32)
            for d in range(D):                   # static: D is tiny (VPU path)
                c = t * D + d
                v = tgt_g[:, c:c + 1]                               # (RG, 1)
                m_dt = mem_ref[pl.ds(c, 1), :].astype(jnp.float32)  # (1, M)
                cross = cross + v * m_dt
                tsq = tsq + v * v
            d2 = msq_t + tsq - 2.0 * cross                          # (RG, M)
            dist = dist + jnp.sqrt(jnp.maximum(d2, 0.0))
        dist = dist * inv_T                                         # (RG, M)

        # argmin over modes, first index on ties (matches torch.argmin).
        min_val = jnp.min(dist, axis=1, keepdims=True)              # (RG, 1)
        label = jnp.min(jnp.where(dist <= min_val, mode_ids, M),
                        axis=1, keepdims=True)                      # (RG, 1) i32

        # cross-entropy: logsumexp(logits) - logits[label]
        maxl = jnp.max(logits, axis=1, keepdims=True)               # (RG, 1)
        lse = maxl + jnp.log(jnp.sum(jnp.exp(logits - maxl),
                                     axis=1, keepdims=True))        # (RG, 1)
        picked = jnp.sum(jnp.where(mode_ids == label, logits, 0.0),
                         axis=1, keepdims=True)                     # (RG, 1)
        loss_g = lse - picked                                       # (RG, 1)

        sel = group_ids == gg                                       # (RG, n_grp)
        loss_mat = jnp.where(sel, loss_g, loss_mat)
        idx_mat = jnp.where(sel, label.astype(jnp.float32), idx_mat)
        return loss_mat, idx_mat

    init = (jnp.zeros((RG, n_groups), jnp.float32),
            jnp.zeros((RG, n_groups), jnp.float32))
    # Bounded unroll: full unroll only for short group loops (avoids vreg
    # pressure / code blowup when TB = 128 -> 16 groups).
    loss_mat, idx_mat = lax.fori_loop(0, n_groups, group, init,
                                      unroll=(n_groups <= 4))

    loss_ref[...] = loss_mat
    idx_ref[...] = idx_mat


def classification_loss(preds, target, memory, *, batch_tile=128):
    """preds: (B, n_modes); target: (B, 1, T, D); memory: (n_modes, T, D)."""
    B, n_modes = preds.shape
    M, T, D = memory.shape
    assert n_modes == M

    cdiv = lambda a, b: -(-a // b)
    RG = ROWS_PER_GROUP
    rows_cap = max(RG, (batch_tile // RG) * RG)     # <= 128 rows per grid step
    G = cdiv(B, rows_cap)                           # grid steps (>=2 once B>128,
    #                                                 so v7x can use both TCs)
    TB = cdiv(cdiv(B, G), RG) * RG                  # balanced rows per step
    n_groups = TB // RG
    B_pad = G * TB

    # Wrapper-side layout plumbing (plain JAX, done once):
    #   modes on the lane axis; (t, d) flattened so lattice/targets are dense
    #   2-D operands; the constant ||mem||^2 plane is precomputed here.
    mem_tdm = jnp.transpose(memory, (1, 2, 0)).reshape(T * D, M)          # (T*D, M)
    mem_sq = jnp.transpose(jnp.sum(memory.astype(jnp.float32) ** 2, axis=2))  # (T, M)
    tgt = target.reshape(B, T * D)                                        # (B, T*D)
    preds_p = preds
    if B_pad != B:
        tgt = jnp.pad(tgt, ((0, B_pad - B), (0, 0)))
        preds_p = jnp.pad(preds, ((0, B_pad - B), (0, 0)))

    losses, idx = pl.pallas_call(
        covernet_loss_kernel,
        out_shape=(jax.ShapeDtypeStruct((G * RG, n_groups), jnp.float32),
                   jax.ShapeDtypeStruct((G * RG, n_groups), jnp.float32)),
        grid_spec=pltpu.PrefetchScalarGridSpec(
            num_scalar_prefetch=0,
            grid=(G,),
            in_specs=[
                # Constant operands: constant index_map -> fetched once, resident.
                pl.BlockSpec((T * D, M), lambda g: (0, 0)),
                pl.BlockSpec((T, M), lambda g: (0, 0)),
                # Per-step batch tiles.
                pl.BlockSpec((TB, T * D), lambda g: (g, 0)),
                pl.BlockSpec((TB, M), lambda g: (g, 0)),
            ],
            out_specs=(
                pl.BlockSpec((RG, n_groups), lambda g: (g, 0)),
                pl.BlockSpec((RG, n_groups), lambda g: (g, 0)),
            ),
        ),
        compiler_params=pltpu.CompilerParams(
            dimension_semantics=("parallel",)),
    )(mem_tdm, mem_sq, tgt, preds_p)

    # out[g*RG + r, gg]  corresponds to batch row  b = g*TB + gg*RG + r.
    losses = losses.reshape(G, RG, n_groups).transpose(0, 2, 1).reshape(-1)[:B]
    true_index = idx.reshape(G, RG, n_groups).transpose(0, 2, 1).reshape(-1)[:B]
    # Final trivial batch-mean (matches batch_losses.mean()).
    return losses.mean(), true_index


def reference(preds, target, memory):
    tgt = target[:, 0]                                        # (B, T, D)
    diff = memory[None, :, :, :] - tgt[:, None, :, :]         # (B, M, T, D)
    dist = jnp.sqrt(jnp.sum(diff * diff, axis=-1)).mean(-1)   # (B, M)
    labels = jnp.argmin(dist, axis=-1)                        # (B,)
    lse = jax.scipy.special.logsumexp(preds, axis=-1)         # (B,)
    picked = jnp.take_along_axis(preds, labels[:, None], axis=-1)[:, 0]
    return (lse - picked).mean(), labels.astype(jnp.float32)


if __name__ == "__main__":
    batch, n_modes, n_timesteps, state_dim = 2, 16, 8, 4

    key = jax.random.PRNGKey(0)
    k_mem, k_preds, k_tgt = jax.random.split(key, 3)
    # Deterministic synthetic "memory" lattice (stands in for the __init__ arg).
    memory = jax.random.normal(k_mem, (n_modes, n_timesteps, state_dim), jnp.float32)
    preds = jax.random.normal(k_preds, (batch, n_modes), jnp.float32)
    target = jax.random.normal(k_tgt, (batch, 1, n_timesteps, state_dim), jnp.float32)

    loss, true_index = classification_loss(preds, target, memory)
    loss = jax.block_until_ready(loss)
    true_index = jax.block_until_ready(true_index)

    ref_loss, ref_idx = reference(preds, target, memory)
    assert jnp.allclose(loss, ref_loss, atol=1e-5, rtol=1e-5), (loss, ref_loss)
    assert jnp.allclose(true_index, ref_idx), (true_index, ref_idx)

    print("KERNEL_OK")
</pallas_src>

<mosaic_0001>
module attributes {stable_mosaic.version = 11 : i64} {
  func.func @covernet_loss_kernel(%arg0: i32, %arg1: memref<32x16xf32, #tpu.memory_space<vmem>>, %arg2: memref<8x16xf32, #tpu.memory_space<vmem>>, %arg3: memref<8x32xf32, #tpu.memory_space<vmem>>, %arg4: memref<8x16xf32, #tpu.memory_space<vmem>>, %arg5: memref<8x1xf32, #tpu.memory_space<vmem>>, %arg6: memref<8x1xf32, #tpu.memory_space<vmem>>) attributes {dimension_semantics = [#tpu.dimension_semantics<parallel>], iteration_bounds = array<i64: 1>, scalar_prefetch = 0 : i64, scratch_operands = 0 : i64, tpu.core_type = #tpu.core_type<tc>, window_params = [{pipeline_mode = #tpu.pipeline_mode<synchronous>, transform_indices = @transform_0, window_bounds = array<i64: 32, 16>}, {pipeline_mode = #tpu.pipeline_mode<synchronous>, transform_indices = @transform_1, window_bounds = array<i64: 8, 16>}, {transform_indices = @transform_2, window_bounds = array<i64: 8, 32>}, {transform_indices = @transform_3, window_bounds = array<i64: 8, 16>}, {transform_indices = @transform_4, window_bounds = array<i64: 8, 1>}, {transform_indices = @transform_5, window_bounds = array<i64: 8, 1>}]} {
    %0 = tpu.iota {dimensions = array<i32: 1>} : vector<8x16xi32>
    %1 = tpu.iota {dimensions = array<i32: 1>} : vector<8x1xi32>
    %cst = arith.constant 0.000000e+00 : f32
    %2 = vector.broadcast %cst : f32 to vector<8x1xf32>
    %cst_0 = arith.constant 0.000000e+00 : f32
    %3 = vector.broadcast %cst_0 : f32 to vector<8x1xf32>
    %cst_1 = arith.constant 1.250000e-01 : f32
    %c0_i32 = arith.constant 0 : i32
    %c8_i32 = arith.constant 8 : i32
    %4 = arith.muli %c0_i32, %c8_i32 : i32
    %5 = tpu.assume_multiple %4, 8 : i32
    %6 = arith.index_cast %5 : i32 to index
    %c0 = arith.constant 0 : index
    %7 = vector.load %arg3[%6, %c0] : memref<8x32xf32, #tpu.memory_space<vmem>>, vector<8x32xf32>
    %8 = arith.index_cast %5 : i32 to index
    %c0_2 = arith.constant 0 : index
    %9 = vector.load %arg4[%8, %c0_2] : memref<8x16xf32, #tpu.memory_space<vmem>>, vector<8x16xf32>
    %cst_3 = arith.constant 0.000000e+00 : f32
    %10 = vector.broadcast %cst_3 : f32 to vector<8x16xf32>
    %c0_4 = arith.constant 0 : index
    %c0_5 = arith.constant 0 : index
    %11 = vector.load %arg2[%c0_4, %c0_5] : memref<8x16xf32, #tpu.memory_space<vmem>>, vector<1x16xf32>
    %cst_6 = arith.constant 0.000000e+00 : f32
    %12 = vector.broadcast %cst_6 : f32 to vector<8x16xf32>
    %cst_7 = arith.constant 0.000000e+00 : f32
    %13 = vector.broadcast %cst_7 : f32 to vector<8x1xf32>
    %14 = vector.extract_strided_slice %7 {offsets = [0, 0], sizes = [8, 1], strides = [1, 1]} : vector<8x32xf32> to vector<8x1xf32>
    %c0_8 = arith.constant 0 : index
    %c0_9 = arith.constant 0 : index
    %15 = vector.load %arg1[%c0_8, %c0_9] : memref<32x16xf32, #tpu.memory_space<vmem>>, vector<1x16xf32>
    %16 = vector.broadcast %14 : vector<8x1xf32> to vector<8x16xf32>
    %17 = vector.broadcast %15 : vector<1x16xf32> to vector<8x16xf32>
    %18 = arith.mulf %16, %17 : vector<8x16xf32>
    %19 = arith.addf %12, %18 : vector<8x16xf32>
    %20 = arith.mulf %14, %14 : vector<8x1xf32>
    %21 = arith.addf %13, %20 : vector<8x1xf32>
    %22 = vector.extract_strided_slice %7 {offsets = [0, 1], sizes = [8, 1], strides = [1, 1]} : vector<8x32xf32> to vector<8x1xf32>
    %c1 = arith.constant 1 : index
    %c0_10 = arith.constant 0 : index
    %23 = vector.load %arg1[%c1, %c0_10] : memref<32x16xf32, #tpu.memory_space<vmem>>, vector<1x16xf32>
    %24 = vector.broadcast %22 : vector<8x1xf32> to vector<8x16xf32>
    %25 = vector.broadcast %23 : vector<1x16xf32> to vector<8x16xf32>
    %26 = arith.mulf %24, %25 : vector<8x16xf32>
    %27 = arith.addf %19, %26 : vector<8x16xf32>
    %28 = arith.mulf %22, %22 : vector<8x1xf32>
    %29 = arith.addf %21, %28 : vector<8x1xf32>
    %30 = vector.extract_strided_slice %7 {offsets = [0, 2], sizes = [8, 1], strides = [1, 1]} : vector<8x32xf32> to vector<8x1xf32>
    %c2 = arith.constant 2 : index
    %c0_11 = arith.constant 0 : index
    %31 = vector.load %arg1[%c2, %c0_11] : memref<32x16xf32, #tpu.memory_space<vmem>>, vector<1x16xf32>
    %32 = vector.broadcast %30 : vector<8x1xf32> to vector<8x16xf32>
    %33 = vector.broadcast %31 : vector<1x16xf32> to vector<8x16xf32>
    %34 = arith.mulf %32, %33 : vector<8x16xf32>
    %35 = arith.addf %27, %34 : vector<8x16xf32>
    %36 = arith.mulf %30, %30 : vector<8x1xf32>
    %37 = arith.addf %29, %36 : vector<8x1xf32>
    %38 = vector.extract_strided_slice %7 {offsets = [0, 3], sizes = [8, 1], strides = [1, 1]} : vector<8x32xf32> to vector<8x1xf32>
    %c3 = arith.constant 3 : index
    %c0_12 = arith.constant 0 : index
    %39 = vector.load %arg1[%c3, %c0_12] : memref<32x16xf32, #tpu.memory_space<vmem>>, vector<1x16xf32>
    %40 = vector.broadcast %38 : vector<8x1xf32> to vector<8x16xf32>
    %41 = vector.broadcast %39 : vector<1x16xf32> to vector<8x16xf32>
    %42 = arith.mulf %40, %41 : vector<8x16xf32>
    %43 = arith.addf %35, %42 : vector<8x16xf32>
    %44 = arith.mulf %38, %38 : vector<8x1xf32>
    %45 = arith.addf %37, %44 : vector<8x1xf32>
    %46 = vector.broadcast %11 : vector<1x16xf32> to vector<8x16xf32>
    %47 = vector.broadcast %45 : vector<8x1xf32> to vector<8x16xf32>
    %48 = arith.addf %46, %47 : vector<8x16xf32>
    %cst_13 = arith.constant 2.000000e+00 : f32
    %49 = vector.broadcast %cst_13 : f32 to vector<8x16xf32>
    %50 = arith.mulf %49, %43 : vector<8x16xf32>
    %51 = arith.subf %48, %50 : vector<8x16xf32>
    %cst_14 = arith.constant 0.000000e+00 : f32
    %52 = vector.broadcast %cst_14 : f32 to vector<8x16xf32>
    %53 = arith.maximumf %51, %52 : vector<8x16xf32>
    %54 = math.sqrt %53 : vector<8x16xf32>
    %55 = arith.addf %10, %54 : vector<8x16xf32>
    %c1_15 = arith.constant 1 : index
    %c0_16 = arith.constant 0 : index
    %56 = vector.load %arg2[%c1_15, %c0_16] : memref<8x16xf32, #tpu.memory_space<vmem>>, vector<1x16xf32>
    %cst_17 = arith.constant 0.000000e+00 : f32
    %57 = vector.broadcast %cst_17 : f32 to vector<8x16xf32>
    %cst_18 = arith.constant 0.000000e+00 : f32
    %58 = vector.broadcast %cst_18 : f32 to vector<8x1xf32>
    %59 = vector.extract_strided_slice %7 {offsets = [0, 4], sizes = [8, 1], strides = [1, 1]} : vector<8x32xf32> to vector<8x1xf32>
    %c4 = arith.constant 4 : index
    %c0_19 = arith.constant 0 : index
    %60 = vector.load %arg1[%c4, %c0_19] : memref<32x16xf32, #tpu.memory_space<vmem>>, vector<1x16xf32>
    %61 = vector.broadcast %59 : vector<8x1xf32> to vector<8x16xf32>
    %62 = vector.broadcast %60 : vector<1x16xf32> to vector<8x16xf32>
    %63 = arith.mulf %61, %62 : vector<8x16xf32>
    %64 = arith.addf %57, %63 : vector<8x16xf32>
    %65 = arith.mulf %59, %59 : vector<8x1xf32>
    %66 = arith.addf %58, %65 : vector<8x1xf32>
    %67 = vector.extract_strided_slice %7 {offsets = [0, 5], sizes = [8, 1], strides = [1, 1]} : vector<8x32xf32> to vector<8x1xf32>
    %c5 = arith.constant 5 : index
    %c0_20 = arith.constant 0 : index
    %68 = vector.load %arg1[%c5, %c0_20] : memref<32x16xf32, #tpu.memory_space<vmem>>, vector<1x16xf32>
    %69 = vector.broadcast %67 : vector<8x1xf32> to vector<8x16xf32>
    %70 = vector.broadcast %68 : vector<1x16xf32> to vector<8x16xf32>
    %71 = arith.mulf %69, %70 : vector<8x16xf32>
    %72 = arith.addf %64, %71 : vector<8x16xf32>
    %73 = arith.mulf %67, %67 : vector<8x1xf32>
    %74 = arith.addf %66, %73 : vector<8x1xf32>
    %75 = vector.extract_strided_slice %7 {offsets = [0, 6], sizes = [8, 1], strides = [1, 1]} : vector<8x32xf32> to vector<8x1xf32>
    %c6 = arith.constant 6 : index
    %c0_21 = arith.constant 0 : index
    %76 = vector.load %arg1[%c6, %c0_21] : memref<32x16xf32, #tpu.memory_space<vmem>>, vector<1x16xf32>
    %77 = vector.broadcast %75 : vector<8x1xf32> to vector<8x16xf32>
    %78 = vector.broadcast %76 : vector<1x16xf32> to vector<8x16xf32>
    %79 = arith.mulf %77, %78 : vector<8x16xf32>
    %80 = arith.addf %72, %79 : vector<8x16xf32>
    %81 = arith.mulf %75, %75 : vector<8x1xf32>
    %82 = arith.addf %74, %81 : vector<8x1xf32>
    %83 = vector.extract_strided_slice %7 {offsets = [0, 7], sizes = [8, 1], strides = [1, 1]} : vector<8x32xf32> to vector<8x1xf32>
    %c7 = arith.constant 7 : index
    %c0_22 = arith.constant 0 : index
    %84 = vector.load %arg1[%c7, %c0_22] : memref<32x16xf32, #tpu.memory_space<vmem>>, vector<1x16xf32>
    %85 = vector.broadcast %83 : vector<8x1xf32> to vector<8x16xf32>
    %86 = vector.broadcast %84 : vector<1x16xf32> to vector<8x16xf32>
    %87 = arith.mulf %85, %86 : vector<8x16xf32>
    %88 = arith.addf %80, %87 : vector<8x16xf32>
    %89 = arith.mulf %83, %83 : vector<8x1xf32>
    %90 = arith.addf %82, %89 : vector<8x1xf32>
    %91 = vector.broadcast %56 : vector<1x16xf32> to vector<8x16xf32>
    %92 = vector.broadcast %90 : vector<8x1xf32> to vector<8x16xf32>
    %93 = arith.addf %91, %92 : vector<8x16xf32>
    %cst_23 = arith.constant 2.000000e+00 : f32
    %94 = vector.broadcast %cst_23 : f32 to vector<8x16xf32>
    %95 = arith.mulf %94, %88 : vector<8x16xf32>
    %96 = arith.subf %93, %95 : vector<8x16xf32>
    %cst_24 = arith.constant 0.000000e+00 : f32
    %97 = vector.broadcast %cst_24 : f32 to vector<8x16xf32>
    %98 = arith.maximumf %96, %97 : vector<8x16xf32>
    %99 = math.sqrt %98 : vector<8x16xf32>
    %100 = arith.addf %55, %99 : vector<8x16xf32>
    %c2_25 = arith.constant 2 : index
    %c0_26 = arith.constant 0 : index
    %101 = vector.load %arg2[%c2_25, %c0_26] : memref<8x16xf32, #tpu.memory_space<vmem>>, vector<1x16xf32>
    %cst_27 = arith.constant 0.000000e+00 : f32
    %102 = vector.broadcast %cst_27 : f32 to vector<8x16xf32>
    %cst_28 = arith.constant 0.000000e+00 : f32
    %103 = vector.broadcast %cst_28 : f32 to vector<8x1xf32>
    %104 = vector.extract_strided_slice %7 {offsets = [0, 8], sizes = [8, 1], strides = [1, 1]} : vector<8x32xf32> to vector<8x1xf32>
    %c8 = arith.constant 8 : index
    %c0_29 = arith.constant 0 : index
    %105 = vector.load %arg1[%c8, %c0_29] : memref<32x16xf32, #tpu.memory_space<vmem>>, vector<1x16xf32>
    %106 = vector.broadcast %104 : vector<8x1xf32> to vector<8x16xf32>
    %107 = vector.broadcast %105 : vector<1x16xf32> to vector<8x16xf32>
    %108 = arith.mulf %106, %107 : vector<8x16xf32>
    %109 = arith.addf %102, %108 : vector<8x16xf32>
    %110 = arith.mulf %104, %104 : vector<8x1xf32>
    %111 = arith.addf %103, %110 : vector<8x1xf32>
    %112 = vector.extract_strided_slice %7 {offsets = [0, 9], sizes = [8, 1], strides = [1, 1]} : vector<8x32xf32> to vector<8x1xf32>
    %c9 = arith.constant 9 : index
    %c0_30 = arith.constant 0 : index
    %113 = vector.load %arg1[%c9, %c0_30] : memref<32x16xf32, #tpu.memory_space<vmem>>, vector<1x16xf32>
    %114 = vector.broadcast %112 : vector<8x1xf32> to vector<8x16xf32>
    %115 = vector.broadcast %113 : vector<1x16xf32> to vector<8x16xf32>
    %116 = arith.mulf %114, %115 : vector<8x16xf32>
    %117 = arith.addf %109, %116 : vector<8x16xf32>
    %118 = arith.mulf %112, %112 : vector<8x1xf32>
    %119 = arith.addf %111, %118 : vector<8x1xf32>
    %120 = vector.extract_strided_slice %7 {offsets = [0, 10], sizes = [8, 1], strides = [1, 1]} : vector<8x32xf32> to vector<8x1xf32>
    %c10 = arith.constant 10 : index
    %c0_31 = arith.constant 0 : index
    %121 = vector.load %arg1[%c10, %c0_31] : memref<32x16xf32, #tpu.memory_space<vmem>>, vector<1x16xf32>
    %122 = vector.broadcast %120 : vector<8x1xf32> to vector<8x16xf32>
    %123 = vector.broadcast %121 : vector<1x16xf32> to vector<8x16xf32>
    %124 = arith.mulf %122, %123 : vector<8x16xf32>
    %125 = arith.addf %117, %124 : vector<8x16xf32>
    %126 = arith.mulf %120, %120 : vector<8x1xf32>
    %127 = arith.addf %119, %126 : vector<8x1xf32>
    %128 = vector.extract_strided_slice %7 {offsets = [0, 11], sizes = [8, 1], strides = [1, 1]} : vector<8x32xf32> to vector<8x1xf32>
    %c11 = arith.constant 11 : index
    %c0_32 = arith.constant 0 : index
    %129 = vector.load %arg1[%c11, %c0_32] : memref<32x16xf32, #tpu.memory_space<vmem>>, vector<1x16xf32>
    %130 = vector.broadcast %128 : vector<8x1xf32> to vector<8x16xf32>
    %131 = vector.broadcast %129 : vector<1x16xf32> to vector<8x16xf32>
    %132 = arith.mulf %130, %131 : vector<8x16xf32>
    %133 = arith.addf %125, %132 : vector<8x16xf32>
    %134 = arith.mulf %128, %128 : vector<8x1xf32>
    %135 = arith.addf %127, %134 : vector<8x1xf32>
    %136 = vector.broadcast %101 : vector<1x16xf32> to vector<8x16xf32>
    %137 = vector.broadcast %135 : vector<8x1xf32> to vector<8x16xf32>
    %138 = arith.addf %136, %137 : vector<8x16xf32>
    %cst_33 = arith.constant 2.000000e+00 : f32
    %139 = vector.broadcast %cst_33 : f32 to vector<8x16xf32>
    %140 = arith.mulf %139, %133 : vector<8x16xf32>
    %141 = arith.subf %138, %140 : vector<8x16xf32>
    %cst_34 = arith.constant 0.000000e+00 : f32
    %142 = vector.broadcast %cst_34 : f32 to vector<8x16xf32>
    %143 = arith.maximumf %141, %142 : vector<8x16xf32>
    %144 = math.sqrt %143 : vector<8x16xf32>
    %145 = arith.addf %100, %144 : vector<8x16xf32>
    %c3_35 = arith.constant 3 : index
    %c0_36 = arith.constant 0 : index
    %146 = vector.load %arg2[%c3_35, %c0_36] : memref<8x16xf32, #tpu.memory_space<vmem>>, vector<1x16xf32>
    %cst_37 = arith.constant 0.000000e+00 : f32
    %147 = vector.broadcast %cst_37 : f32 to vector<8x16xf32>
    %cst_38 = arith.constant 0.000000e+00 : f32
    %148 = vector.broadcast %cst_38 : f32 to vector<8x1xf32>
    %149 = vector.extract_strided_slice %7 {offsets = [0, 12], sizes = [8, 1], strides = [1, 1]} : vector<8x32xf32> to vector<8x1xf32>
    %c12 = arith.constant 12 : index
    %c0_39 = arith.constant 0 : index
    %150 = vector.load %arg1[%c12, %c0_39] : memref<32x16xf32, #tpu.memory_space<vmem>>, vector<1x16xf32>
    %151 = vector.broadcast %149 : vector<8x1xf32> to vector<8x16xf32>
    %152 = vector.broadcast %150 : vector<1x16xf32> to vector<8x16xf32>
    %153 = arith.mulf %151, %152 : vector<8x16xf32>
    %154 = arith.addf %147, %153 : vector<8x16xf32>
    %155 = arith.mulf %149, %149 : vector<8x1xf32>
    %156 = arith.addf %148, %155 : vector<8x1xf32>
    %157 = vector.extract_strided_slice %7 {offsets = [0, 13], sizes = [8, 1], strides = [1, 1]} : vector<8x32xf32> to vector<8x1xf32>
    %c13 = arith.constant 13 : index
    %c0_40 = arith.constant 0 : index
    %158 = vector.load %arg1[%c13, %c0_40] : memref<32x16xf32, #tpu.memory_space<vmem>>, vector<1x16xf32>
    %159 = vector.broadcast %157 : vector<8x1xf32> to vector<8x16xf32>
    %160 = vector.broadcast %158 : vector<1x16xf32> to vector<8x16xf32>
    %161 = arith.mulf %159, %160 : vector<8x16xf32>
    %162 = arith.addf %154, %161 : vector<8x16xf32>
    %163 = arith.mulf %157, %157 : vector<8x1xf32>
    %164 = arith.addf %156, %163 : vector<8x1xf32>
    %165 = vector.extract_strided_slice %7 {offsets = [0, 14], sizes = [8, 1], strides = [1, 1]} : vector<8x32xf32> to vector<8x1xf32>
    %c14 = arith.constant 14 : index
    %c0_41 = arith.constant 0 : index
    %166 = vector.load %arg1[%c14, %c0_41] : memref<32x16xf32, #tpu.memory_space<vmem>>, vector<1x16xf32>
    %167 = vector.broadcast %165 : vector<8x1xf32> to vector<8x16xf32>
    %168 = vector.broadcast %166 : vector<1x16xf32> to vector<8x16xf32>
    %169 = arith.mulf %167, %168 : vector<8x16xf32>
    %170 = arith.addf %162, %169 : vector<8x16xf32>
    %171 = arith.mulf %165, %165 : vector<8x1xf32>
    %172 = arith.addf %164, %171 : vector<8x1xf32>
    %173 = vector.extract_strided_slice %7 {offsets = [0, 15], sizes = [8, 1], strides = [1, 1]} : vector<8x32xf32> to vector<8x1xf32>
    %c15 = arith.constant 15 : index
    %c0_42 = arith.constant 0 : index
    %174 = vector.load %arg1[%c15, %c0_42] : memref<32x16xf32, #tpu.memory_space<vmem>>, vector<1x16xf32>
    %175 = vector.broadcast %173 : vector<8x1xf32> to vector<8x16xf32>
    %176 = vector.broadcast %174 : vector<1x16xf32> to vector<8x16xf32>
    %177 = arith.mulf %175, %176 : vector<8x16xf32>
    %178 = arith.addf %170, %177 : vector<8x16xf32>
    %179 = arith.mulf %173, %173 : vector<8x1xf32>
    %180 = arith.addf %172, %179 : vector<8x1xf32>
    %181 = vector.broadcast %146 : vector<1x16xf32> to vector<8x16xf32>
    %182 = vector.broadcast %180 : vector<8x1xf32> to vector<8x16xf32>
    %183 = arith.addf %181, %182 : vector<8x16xf32>
    %cst_43 = arith.constant 2.000000e+00 : f32
    %184 = vector.broadcast %cst_43 : f32 to vector<8x16xf32>
    %185 = arith.mulf %184, %178 : vector<8x16xf32>
    %186 = arith.subf %183, %185 : vector<8x16xf32>
    %cst_44 = arith.constant 0.000000e+00 : f32
    %187 = vector.broadcast %cst_44 : f32 to vector<8x16xf32>
    %188 = arith.maximumf %186, %187 : vector<8x16xf32>
    %189 = math.sqrt %188 : vector<8x16xf32>
    %190 = arith.addf %145, %189 : vector<8x16xf32>
    %c4_45 = arith.constant 4 : index
    %c0_46 = arith.constant 0 : index
    %191 = vector.load %arg2[%c4_45, %c0_46] : memref<8x16xf32, #tpu.memory_space<vmem>>, vector<1x16xf32>
    %cst_47 = arith.constant 0.000000e+00 : f32
    %192 = vector.broadcast %cst_47 : f32 to vector<8x16xf32>
    %cst_48 = arith.constant 0.000000e+00 : f32
    %193 = vector.broadcast %cst_48 : f32 to vector<8x1xf32>
    %194 = vector.extract_strided_slice %7 {offsets = [0, 16], sizes = [8, 1], strides = [1, 1]} : vector<8x32xf32> to vector<8x1xf32>
    %c16 = arith.constant 16 : index
    %c0_49 = arith.constant 0 : index
    %195 = vector.load %arg1[%c16, %c0_49] : memref<32x16xf32, #tpu.memory_space<vmem>>, vector<1x16xf32>
    %196 = vector.broadcast %194 : vector<8x1xf32> to vector<8x16xf32>
    %197 = vector.broadcast %195 : vector<1x16xf32> to vector<8x16xf32>
    %198 = arith.mulf %196, %197 : vector<8x16xf32>
    %199 = arith.addf %192, %198 : vector<8x16xf32>
    %200 = arith.mulf %194, %194 : vector<8x1xf32>
    %201 = arith.addf %193, %200 : vector<8x1xf32>
    %202 = vector.extract_strided_slice %7 {offsets = [0, 17], sizes = [8, 1], strides = [1, 1]} : vector<8x32xf32> to vector<8x1xf32>
    %c17 = arith.constant 17 : index
    %c0_50 = arith.constant 0 : index
    %203 = vector.load %arg1[%c17, %c0_50] : memref<32x16xf32, #tpu.memory_space<vmem>>, vector<1x16xf32>
    %204 = vector.broadcast %202 : vector<8x1xf32> to vector<8x16xf32>
    %205 = vector.broadcast %203 : vector<1x16xf32> to vector<8x16xf32>
    %206 = arith.mulf %204, %205 : vector<8x16xf32>
    %207 = arith.addf %199, %206 : vector<8x16xf32>
    %208 = arith.mulf %202, %202 : vector<8x1xf32>
    %209 = arith.addf %201, %208 : vector<8x1xf32>
    %210 = vector.extract_strided_slice %7 {offsets = [0, 18], sizes = [8, 1], strides = [1, 1]} : vector<8x32xf32> to vector<8x1xf32>
    %c18 = arith.constant 18 : index
    %c0_51 = arith.constant 0 : index
    %211 = vector.load %arg1[%c18, %c0_51] : memref<32x16xf32, #tpu.memory_space<vmem>>, vector<1x16xf32>
    %212 = vector.broadcast %210 : vector<8x1xf32> to vector<8x16xf32>
    %213 = vector.broadcast %211 : vector<1x16xf32> to vector<8x16xf32>
    %214 = arith.mulf %212, %213 : vector<8x16xf32>
    %215 = arith.addf %207, %214 : vector<8x16xf32>
    %216 = arith.mulf %210, %210 : vector<8x1xf32>
    %217 = arith.addf %209, %216 : vector<8x1xf32>
    %218 = vector.extract_strided_slice %7 {offsets = [0, 19], sizes = [8, 1], strides = [1, 1]} : vector<8x32xf32> to vector<8x1xf32>
    %c19 = arith.constant 19 : index
    %c0_52 = arith.constant 0 : index
    %219 = vector.load %arg1[%c19, %c0_52] : memref<32x16xf32, #tpu.memory_space<vmem>>, vector<1x16xf32>
    %220 = vector.broadcast %218 : vector<8x1xf32> to vector<8x16xf32>
    %221 = vector.broadcast %219 : vector<1x16xf32> to vector<8x16xf32>
    %222 = arith.mulf %220, %221 : vector<8x16xf32>
    %223 = arith.addf %215, %222 : vector<8x16xf32>
    %224 = arith.mulf %218, %218 : vector<8x1xf32>
    %225 = arith.addf %217, %224 : vector<8x1xf32>
    %226 = vector.broadcast %191 : vector<1x16xf32> to vector<8x16xf32>
    %227 = vector.broadcast %225 : vector<8x1xf32> to vector<8x16xf32>
    %228 = arith.addf %226, %227 : vector<8x16xf32>
    %cst_53 = arith.constant 2.000000e+00 : f32
    %229 = vector.broadcast %cst_53 : f32 to vector<8x16xf32>
    %230 = arith.mulf %229, %223 : vector<8x16xf32>
    %231 = arith.subf %228, %230 : vector<8x16xf32>
    %cst_54 = arith.constant 0.000000e+00 : f32
    %232 = vector.broadcast %cst_54 : f32 to vector<8x16xf32>
    %233 = arith.maximumf %231, %232 : vector<8x16xf32>
    %234 = math.sqrt %233 : vector<8x16xf32>
    %235 = arith.addf %190, %234 : vector<8x16xf32>
    %c5_55 = arith.constant 5 : index
    %c0_56 = arith.constant 0 : index
    %236 = vector.load %arg2[%c5_55, %c0_56] : memref<8x16xf32, #tpu.memory_space<vmem>>, vector<1x16xf32>
    %cst_57 = arith.constant 0.000000e+00 : f32
    %237 = vector.broadcast %cst_57 : f32 to vector<8x16xf32>
    %cst_58 = arith.constant 0.000000e+00 : f32
    %238 = vector.broadcast %cst_58 : f32 to vector<8x1xf32>
    %239 = vector.extract_strided_slice %7 {offsets = [0, 20], sizes = [8, 1], strides = [1, 1]} : vector<8x32xf32> to vector<8x1xf32>
    %c20 = arith.constant 20 : index
    %c0_59 = arith.constant 0 : index
    %240 = vector.load %arg1[%c20, %c0_59] : memref<32x16xf32, #tpu.memory_space<vmem>>, vector<1x16xf32>
    %241 = vector.broadcast %239 : vector<8x1xf32> to vector<8x16xf32>
    %242 = vector.broadcast %240 : vector<1x16xf32> to vector<8x16xf32>
    %243 = arith.mulf %241, %242 : vector<8x16xf32>
    %244 = arith.addf %237, %243 : vector<8x16xf32>
    %245 = arith.mulf %239, %239 : vector<8x1xf32>
    %246 = arith.addf %238, %245 : vector<8x1xf32>
    %247 = vector.extract_strided_slice %7 {offsets = [0, 21], sizes = [8, 1], strides = [1, 1]} : vector<8x32xf32> to vector<8x1xf32>
    %c21 = arith.constant 21 : index
    %c0_60 = arith.constant 0 : index
    %248 = vector.load %arg1[%c21, %c0_60] : memref<32x16xf32, #tpu.memory_space<vmem>>, vector<1x16xf32>
    %249 = vector.broadcast %247 : vector<8x1xf32> to vector<8x16xf32>
    %250 = vector.broadcast %248 : vector<1x16xf32> to vector<8x16xf32>
    %251 = arith.mulf %249, %250 : vector<8x16xf32>
    %252 = arith.addf %244, %251 : vector<8x16xf32>
    %253 = arith.mulf %247, %247 : vector<8x1xf32>
    %254 = arith.addf %246, %253 : vector<8x1xf32>
    %255 = vector.extract_strided_slice %7 {offsets = [0, 22], sizes = [8, 1], strides = [1, 1]} : vector<8x32xf32> to vector<8x1xf32>
    %c22 = arith.constant 22 : index
    %c0_61 = arith.constant 0 : index
    %256 = vector.load %arg1[%c22, %c0_61] : memref<32x16xf32, #tpu.memory_space<vmem>>, vector<1x16xf32>
    %257 = vector.broadcast %255 : vector<8x1xf32> to vector<8x16xf32>
    %258 = vector.broadcast %256 : vector<1x16xf32> to vector<8x16xf32>
    %259 = arith.mulf %257, %258 : vector<8x16xf32>
    %260 = arith.addf %252, %259 : vector<8x16xf32>
    %261 = arith.mulf %255, %255 : vector<8x1xf32>
    %262 = arith.addf %254, %261 : vector<8x1xf32>
    %263 = vector.extract_strided_slice %7 {offsets = [0, 23], sizes = [8, 1], strides = [1, 1]} : vector<8x32xf32> to vector<8x1xf32>
    %c23 = arith.constant 23 : index
    %c0_62 = arith.constant 0 : index
    %264 = vector.load %arg1[%c23, %c0_62] : memref<32x16xf32, #tpu.memory_space<vmem>>, vector<1x16xf32>
    %265 = vector.broadcast %263 : vector<8x1xf32> to vector<8x16xf32>
    %266 = vector.broadcast %264 : vector<1x16xf32> to vector<8x16xf32>
    %267 = arith.mulf %265, %266 : vector<8x16xf32>
    %268 = arith.addf %260, %267 : vector<8x16xf32>
    %269 = arith.mulf %263, %263 : vector<8x1xf32>
    %270 = arith.addf %262, %269 : vector<8x1xf32>
    %271 = vector.broadcast %236 : vector<1x16xf32> to vector<8x16xf32>
    %272 = vector.broadcast %270 : vector<8x1xf32> to vector<8x16xf32>
    %273 = arith.addf %271, %272 : vector<8x16xf32>
    %cst_63 = arith.constant 2.000000e+00 : f32
    %274 = vector.broadcast %cst_63 : f32 to vector<8x16xf32>
    %275 = arith.mulf %274, %268 : vector<8x16xf32>
    %276 = arith.subf %273, %275 : vector<8x16xf32>
    %cst_64 = arith.constant 0.000000e+00 : f32
    %277 = vector.broadcast %cst_64 : f32 to vector<8x16xf32>
    %278 = arith.maximumf %276, %277 : vector<8x16xf32>
    %279 = math.sqrt %278 : vector<8x16xf32>
    %280 = arith.addf %235, %279 : vector<8x16xf32>
    %c6_65 = arith.constant 6 : index
    %c0_66 = arith.constant 0 : index
    %281 = vector.load %arg2[%c6_65, %c0_66] : memref<8x16xf32, #tpu.memory_space<vmem>>, vector<1x16xf32>
    %cst_67 = arith.constant 0.000000e+00 : f32
    %282 = vector.broadcast %cst_67 : f32 to vector<8x16xf32>
    %cst_68 = arith.constant 0.000000e+00 : f32
    %283 = vector.broadcast %cst_68 : f32 to vector<8x1xf32>
    %284 = vector.extract_strided_slice %7 {offsets = [0, 24], sizes = [8, 1], strides = [1, 1]} : vector<8x32xf32> to vector<8x1xf32>
    %c24 = arith.constant 24 : index
    %c0_69 = arith.constant 0 : index
    %285 = vector.load %arg1[%c24, %c0_69] : memref<32x16xf32, #tpu.memory_space<vmem>>, vector<1x16xf32>
    %286 = vector.broadcast %284 : vector<8x1xf32> to vector<8x16xf32>
    %287 = vector.broadcast %285 : vector<1x16xf32> to vector<8x16xf32>
    %288 = arith.mulf %286, %287 : vector<8x16xf32>
    %289 = arith.addf %282, %288 : vector<8x16xf32>
    %290 = arith.mulf %284, %284 : vector<8x1xf32>
    %291 = arith.addf %283, %290 : vector<8x1xf32>
    %292 = vector.extract_strided_slice %7 {offsets = [0, 25], sizes = [8, 1], strides = [1, 1]} : vector<8x32xf32> to vector<8x1xf32>
    %c25 = arith.constant 25 : index
    %c0_70 = arith.constant 0 : index
    %293 = vector.load %arg1[%c25, %c0_70] : memref<32x16xf32, #tpu.memory_space<vmem>>, vector<1x16xf32>
    %294 = vector.broadcast %292 : vector<8x1xf32> to vector<8x16xf32>
    %295 = vector.broadcast %293 : vector<1x16xf32> to vector<8x16xf32>
    %296 = arith.mulf %294, %295 : vector<8x16xf32>
    %297 = arith.addf %289, %296 : vector<8x16xf32>
    %298 = arith.mulf %292, %292 : vector<8x1xf32>
    %299 = arith.addf %291, %298 : vector<8x1xf32>
    %300 = vector.extract_strided_slice %7 {offsets = [0, 26], sizes = [8, 1], strides = [1, 1]} : vector<8x32xf32> to vector<8x1xf32>
    %c26 = arith.constant 26 : index
    %c0_71 = arith.constant 0 : index
    %301 = vector.load %arg1[%c26, %c0_71] : memref<32x16xf32, #tpu.memory_space<vmem>>, vector<1x16xf32>
    %302 = vector.broadcast %300 : vector<8x1xf32> to vector<8x16xf32>
    %303 = vector.broadcast %301 : vector<1x16xf32> to vector<8x16xf32>
    %304 = arith.mulf %302, %303 : vector<8x16xf32>
    %305 = arith.addf %297, %304 : vector<8x16xf32>
    %306 = arith.mulf %300, %300 : vector<8x1xf32>
    %307 = arith.addf %299, %306 : vector<8x1xf32>
    %308 = vector.extract_strided_slice %7 {offsets = [0, 27], sizes = [8, 1], strides = [1, 1]} : vector<8x32xf32> to vector<8x1xf32>
    %c27 = arith.constant 27 : index
    %c0_72 = arith.constant 0 : index
    %309 = vector.load %arg1[%c27, %c0_72] : memref<32x16xf32, #tpu.memory_space<vmem>>, vector<1x16xf32>
    %310 = vector.broadcast %308 : vector<8x1xf32> to vector<8x16xf32>
    %311 = vector.broadcast %309 : vector<1x16xf32> to vector<8x16xf32>
    %312 = arith.mulf %310, %311 : vector<8x16xf32>
    %313 = arith.addf %305, %312 : vector<8x16xf32>
    %314 = arith.mulf %308, %308 : vector<8x1xf32>
    %315 = arith.addf %307, %314 : vector<8x1xf32>
    %316 = vector.broadcast %281 : vector<1x16xf32> to vector<8x16xf32>
    %317 = vector.broadcast %315 : vector<8x1xf32> to vector<8x16xf32>
    %318 = arith.addf %316, %317 : vector<8x16xf32>
    %cst_73 = arith.constant 2.000000e+00 : f32
    %319 = vector.broadcast %cst_73 : f32 to vector<8x16xf32>
    %320 = arith.mulf %319, %313 : vector<8x16xf32>
    %321 = arith.subf %318, %320 : vector<8x16xf32>
    %cst_74 = arith.constant 0.000000e+00 : f32
    %322 = vector.broadcast %cst_74 : f32 to vector<8x16xf32>
    %323 = arith.maximumf %321, %322 : vector<8x16xf32>
    %324 = math.sqrt %323 : vector<8x16xf32>
    %325 = arith.addf %280, %324 : vector<8x16xf32>
    %c7_75 = arith.constant 7 : index
    %c0_76 = arith.constant 0 : index
    %326 = vector.load %arg2[%c7_75, %c0_76] : memref<8x16xf32, #tpu.memory_space<vmem>>, vector<1x16xf32>
    %cst_77 = arith.constant 0.000000e+00 : f32
    %327 = vector.broadcast %cst_77 : f32 to vector<8x16xf32>
    %cst_78 = arith.constant 0.000000e+00 : f32
    %328 = vector.broadcast %cst_78 : f32 to vector<8x1xf32>
    %329 = vector.extract_strided_slice %7 {offsets = [0, 28], sizes = [8, 1], strides = [1, 1]} : vector<8x32xf32> to vector<8x1xf32>
    %c28 = arith.constant 28 : index
    %c0_79 = arith.constant 0 : index
    %330 = vector.load %arg1[%c28, %c0_79] : memref<32x16xf32, #tpu.memory_space<vmem>>, vector<1x16xf32>
    %331 = vector.broadcast %329 : vector<8x1xf32> to vector<8x16xf32>
    %332 = vector.broadcast %330 : vector<1x16xf32> to vector<8x16xf32>
    %333 = arith.mulf %331, %332 : vector<8x16xf32>
    %334 = arith.addf %327, %333 : vector<8x16xf32>
    %335 = arith.mulf %329, %329 : vector<8x1xf32>
    %336 = arith.addf %328, %335 : vector<8x1xf32>
    %337 = vector.extract_strided_slice %7 {offsets = [0, 29], sizes = [8, 1], strides = [1, 1]} : vector<8x32xf32> to vector<8x1xf32>
    %c29 = arith.constant 29 : index
    %c0_80 = arith.constant 0 : index
    %338 = vector.load %arg1[%c29, %c0_80] : memref<32x16xf32, #tpu.memory_space<vmem>>, vector<1x16xf32>
    %339 = vector.broadcast %337 : vector<8x1xf32> to vector<8x16xf32>
    %340 = vector.broadcast %338 : vector<1x16xf32> to vector<8x16xf32>
    %341 = arith.mulf %339, %340 : vector<8x16xf32>
    %342 = arith.addf %334, %341 : vector<8x16xf32>
    %343 = arith.mulf %337, %337 : vector<8x1xf32>
    %344 = arith.addf %336, %343 : vector<8x1xf32>
    %345 = vector.extract_strided_slice %7 {offsets = [0, 30], sizes = [8, 1], strides = [1, 1]} : vector<8x32xf32> to vector<8x1xf32>
    %c30 = arith.constant 30 : index
    %c0_81 = arith.constant 0 : index
    %346 = vector.load %arg1[%c30, %c0_81] : memref<32x16xf32, #tpu.memory_space<vmem>>, vector<1x16xf32>
    %347 = vector.broadcast %345 : vector<8x1xf32> to vector<8x16xf32>
    %348 = vector.broadcast %346 : vector<1x16xf32> to vector<8x16xf32>
    %349 = arith.mulf %347, %348 : vector<8x16xf32>
    %350 = arith.addf %342, %349 : vector<8x16xf32>
    %351 = arith.mulf %345, %345 : vector<8x1xf32>
    %352 = arith.addf %344, %351 : vector<8x1xf32>
    %353 = vector.extract_strided_slice %7 {offsets = [0, 31], sizes = [8, 1], strides = [1, 1]} : vector<8x32xf32> to vector<8x1xf32>
    %c31 = arith.constant 31 : index
    %c0_82 = arith.constant 0 : index
    %354 = vector.load %arg1[%c31, %c0_82] : memref<32x16xf32, #tpu.memory_space<vmem>>, vector<1x16xf32>
    %355 = vector.broadcast %353 : vector<8x1xf32> to vector<8x16xf32>
    %356 = vector.broadcast %354 : vector<1x16xf32> to vector<8x16xf32>
    %357 = arith.mulf %355, %356 : vector<8x16xf32>
    %358 = arith.addf %350, %357 : vector<8x16xf32>
    %359 = arith.mulf %353, %353 : vector<8x1xf32>
    %360 = arith.addf %352, %359 : vector<8x1xf32>
    %361 = vector.broadcast %326 : vector<1x16xf32> to vector<8x16xf32>
    %362 = vector.broadcast %360 : vector<8x1xf32> to vector<8x16xf32>
    %363 = arith.addf %361, %362 : vector<8x16xf32>
    %cst_83 = arith.constant 2.000000e+00 : f32
    %364 = vector.broadcast %cst_83 : f32 to vector<8x16xf32>
    %365 = arith.mulf %364, %358 : vector<8x16xf32>
    %366 = arith.subf %363, %365 : vector<8x16xf32>
    %cst_84 = arith.constant 0.000000e+00 : f32
    %367 = vector.broadcast %cst_84 : f32 to vector<8x16xf32>
    %368 = arith.maximumf %366, %367 : vector<8x16xf32>
    %369 = math.sqrt %368 : vector<8x16xf32>
    %370 = arith.addf %325, %369 : vector<8x16xf32>
    %371 = vector.broadcast %cst_1 : f32 to vector<8x16xf32>
    %372 = arith.mulf %370, %371 : vector<8x16xf32>
    %cst_85 = arith.constant dense<0x7F800000> : vector<8xf32>
    %373 = vector.multi_reduction <minimumf>, %372, %cst_85 [1] : vector<8x16xf32> to vector<8xf32>
    %374 = vector.shape_cast %373 : vector<8xf32> to vector<8x1xf32>
    %375 = vector.broadcast %374 : vector<8x1xf32> to vector<8x16xf32>
    %376 = arith.cmpf ole, %372, %375 : vector<8x16xf32>
    %c16_i32 = arith.constant 16 : i32
    %377 = vector.broadcast %c16_i32 : i32 to vector<8x16xi32>
    %378 = arith.select %376, %0, %377 : vector<8x16xi1>, vector<8x16xi32>
    %cst_86 = arith.constant dense<2147483647> : vector<8xi32>
    %379 = vector.multi_reduction <minsi>, %378, %cst_86 [1] : vector<8x16xi32> to vector<8xi32>
    %380 = vector.shape_cast %379 : vector<8xi32> to vector<8x1xi32>
    %cst_87 = arith.constant dense<0xFF800000> : vector<8xf32>
    %381 = vector.multi_reduction <maximumf>, %9, %cst_87 [1] : vector<8x16xf32> to vector<8xf32>
    %382 = vector.shape_cast %381 : vector<8xf32> to vector<8x1xf32>
    %383 = vector.broadcast %382 : vector<8x1xf32> to vector<8x16xf32>
    %384 = arith.subf %9, %383 : vector<8x16xf32>
    %385 = math.exp %384 : vector<8x16xf32>
    %cst_88 = arith.constant dense<0.000000e+00> : vector<8xf32>
    %386 = vector.multi_reduction <add>, %385, %cst_88 [1] : vector<8x16xf32> to vector<8xf32>
    %387 = vector.shape_cast %386 : vector<8xf32> to vector<8x1xf32>
    %388 = math.log %387 : vector<8x1xf32>
    %389 = arith.addf %382, %388 : vector<8x1xf32>
    %390 = vector.broadcast %380 : vector<8x1xi32> to vector<8x16xi32>
    %391 = arith.cmpi eq, %0, %390 : vector<8x16xi32>
    %cst_89 = arith.constant 0.000000e+00 : f32
    %392 = vector.broadcast %cst_89 : f32 to vector<8x16xf32>
    %393 = arith.select %391, %9, %392 : vector<8x16xi1>, vector<8x16xf32>
    %cst_90 = arith.constant dense<0.000000e+00> : vector<8xf32>
    %394 = vector.multi_reduction <add>, %393, %cst_90 [1] : vector<8x16xf32> to vector<8xf32>
    %395 = vector.shape_cast %394 : vector<8xf32> to vector<8x1xf32>
    %396 = arith.subf %389, %395 : vector<8x1xf32>
    %397 = vector.broadcast %c0_i32 : i32 to vector<8x1xi32>
    %398 = arith.cmpi eq, %1, %397 : vector<8x1xi32>
    %399 = arith.select %398, %396, %2 : vector<8x1xi1>, vector<8x1xf32>
    %400 = arith.sitofp %380 : vector<8x1xi32> to vector<8x1xf32>
    %401 = arith.select %398, %400, %3 : vector<8x1xi1>, vector<8x1xf32>
    %c1_i32 = arith.constant 1 : i32
    %c0_91 = arith.constant 0 : index
    %c0_92 = arith.constant 0 : index
    %402 = vector.load %arg5[%c0_91, %c0_92] : memref<8x1xf32, #tpu.memory_space<vmem>>, vector<8x1xf32>
    tpu.vector_store %arg5[%c0_91, %c0_92], %399 {strides = array<i32>} : memref<8x1xf32, #tpu.memory_space<vmem>>, vector<8x1xf32>,
    %c0_93 = arith.constant 0 : index
    %c0_94 = arith.constant 0 : index
    %403 = vector.load %arg6[%c0_93, %c0_94] : memref<8x1xf32, #tpu.memory_space<vmem>>, vector<8x1xf32>
    tpu.vector_store %arg6[%c0_93, %c0_94], %401 {strides = array<i32>} : memref<8x1xf32, #tpu.memory_space<vmem>>, vector<8x1xf32>,
    return
  }
  func.func @transform_0(%arg0: i32) -> (i32, i32) {
    %c0_i32 = arith.constant 0 : i32
    %c0_i32_0 = arith.constant 0 : i32
    %c0_i32_1 = arith.constant 0 : i32
    return %c0_i32, %c0_i32_0 : i32, i32
  }
  func.func @transform_1(%arg0: i32) -> (i32, i32) {
    %c0_i32 = arith.constant 0 : i32
    %c0_i32_0 = arith.constant 0 : i32
    %c0_i32_1 = arith.constant 0 : i32
    return %c0_i32, %c0_i32_0 : i32, i32
  }
  func.func @transform_2(%arg0: i32) -> (i32, i32) {
    %c0_i32 = arith.constant 0 : i32
    %c0_i32_0 = arith.constant 0 : i32
    return %arg0, %c0_i32 : i32, i32
  }
  func.func @transform_3(%arg0: i32) -> (i32, i32) {
    %c0_i32 = arith.constant 0 : i32
    %c0_i32_0 = arith.constant 0 : i32
    return %arg0, %c0_i32 : i32, i32
  }
  func.func @transform_4(%arg0: i32) -> (i32, i32) {
    %c0_i32 = arith.constant 0 : i32
    %c0_i32_0 = arith.constant 0 : i32
    return %arg0, %c0_i32 : i32, i32
  }
  func.func @transform_5(%arg0: i32) -> (i32, i32) {
    %c0_i32 = arith.constant 0 : i32
    %c0_i32_0 = arith.constant 0 : i32
    return %arg0, %c0_i32 : i32, i32
  }
}

</mosaic_0001>

<bundles_post_ra>
// kernel: tpu_custom_call.1
= control target key start
LH: loop header
LB: loop body
LE: loop exit
PB: predicated region body
PF: predicated region fallthrough
CT: control target
= control target key end

     0   :  { %v751_v0 = vmov 0   ;;  %v752_v2 = vmov 1   ;;  %s753_s20 = smov 127   ;;  %s754_s21 = smov 125   ;;  %v755_v4 = vmov 4   ;;  %v757_v5 = vmov 5   ;;  %s1082_s2 = inlined_call_operand.vmem [shape: f32[8,32], index: 2, kind: input, shape index: {}]   ;;  %s1083_s0 = inlined_call_operand.vmem [shape: f32[32,16], index: 0, kind: input, shape index: {}]   ;;  %s1084_s1 = inlined_call_operand.vmem [shape: f32[8,16], index: 1, kind: input, shape index: {}]   ;;  %s1085_s3 = inlined_call_operand.vmem [shape: f32[8,16], index: 3, kind: input, shape index: {}]   ;;  %s1086_s5 = inlined_call_operand.vmem [shape: f32[8,1], index: 5, kind: output, shape index: {1}]   ;;  %s1087_s4 = inlined_call_operand.vmem [shape: f32[8,1], index: 4, kind: output, shape index: {0}]  }
   0x1   :  { %690 = vset.pattern.permute.xlu1 %v751_v0  ;;  %v820_v1 = vld [vmem:[%s1082_s2] sm:$0xff]  ;;  %691 = vset.pattern.permute.xlu0 %v752_v2  ;;  %s756_s22 = smov 126   ;;  %v758_v6 = vmov 2   ;;  %v759_v7 = vmov 6   ;;  %v760_v8 = vmov 9   ;;  %v761_v9 = vmov 8  }
   0x2   :  { %27 = vperm.xlu1 %690, %v820_v1   ;;  %v825_v3 = vmul.f32 %v820_v1, %v820_v1  ;;  %v762_v10 = vmov 10   ;;  %v763_v11 = vmov 3   ;;  %v764_v12 = vmov 11   ;;  %v620_v41 = vld [vmem:[%s1083_s0 + $0x4] ss:$0 sm:$0xff] }
   0x3   :  { %v765_v13 = vmov 7   ;;  %v766_v14 = vmov 17   ;;  %v767_v15 = vmov 12   ;;  %v768_v16 = vmov 15   ;;  %v621_v43 = vld [vmem:[%s1083_s0 + $0x5] ss:$0 sm:$0xff] }
   0x4   :  { %50 = vrot.lane.b32.xlu0 %v825_v3, %s753_s20  ;;  %v769_v17 = vmov 13   ;;  %v770_v18 = vmov 21   ;;  %v771_v19 = vmov 14   ;;  %v772_v20 = vmov 22   ;;  %v622_v49 = vld [vmem:[%s1083_s0 + $0x6] ss:$0 sm:$0xff] }
   0x5   :  { %v773_v21 = vmov 16   ;;  %v774_v22 = vmov 28   ;;  %v775_v23 = vmov 18   ;;  %v776_v24 = vmov 27   ;;  %v616_v52 = vld [vmem:[%s1083_s0 + $0x1] ss:$0 sm:$0xff] }
   0x6   :  { %80 = vrot.lane.b32.xlu1 %v825_v3, %s754_s21  ;;  %v777_v25 = vmov 20   ;;  %v778_v26 = vmov 19   ;;  %v779_v27 = vmov 24   ;;  %v780_v28 = vmov 25   ;;  %v615_v54 = vld [vmem:[%s1083_s0] ss:$0 sm:$0xff] }
   0x7   :  { %692 = vset.pattern.permute.xlu1 %v755_v4  ;;  %v781_v29 = vmov 23   ;;  %v782_v30 = vmov 26   ;;  %v783_v31 = vmov 29   ;;  %v784_v32 = vmov 30   ;;  %v617_v56 = vld [vmem:[%s1083_s0 + $0x2] ss:$0 sm:$0xff] }
   0x8   :  { %65 = vrot.lane.b32.xlu0 %v825_v3, %s756_s22  ;;  %v785_v42 = vmov 31   ;;  %v618_v61 = vld [vmem:[%s1083_s0 + $0x3] ss:$0 sm:$0xff] }
   0xa   :  { %108 = vperm.xlu1 %692, %v820_v1  }
   0xc   :  { %40 = vperm.xlu0 %691, %v820_v1  }
   0xe   :  { %693 = vset.pattern.permute.xlu1 %v757_v5 }
   0xf   :  { %119 = vperm.xlu1 %693, %v820_v1  }
  0x10   :  { %694 = vset.pattern.permute.xlu0 %v758_v6 }
  0x11   :  { %56 = vperm.xlu0 %694, %v820_v1  }
  0x13   :  { %695 = vset.pattern.permute.xlu1 %v759_v7 }
  0x14   :  { %130 = vperm.xlu1 %695, %v820_v1  }
  0x15   :  { %697 = vset.pattern.permute.xlu0 %v760_v8 }
  0x16   :  { %184 = vperm.xlu0 %697, %v820_v1  }
  0x18   :  { %696 = vset.pattern.permute.xlu1 %v761_v9 }
  0x19   :  { %173 = vperm.xlu1 %696, %v820_v1  }
  0x1a   :  { %700 = vset.pattern.permute.xlu0 %v762_v10 }
  0x1b   :  { %195 = vperm.xlu0 %700, %v820_v1  }
  0x1d   :  { %698 = vset.pattern.permute.xlu1 %v763_v11 }
  0x1e   :  { %71 = vperm.xlu1 %698, %v820_v1  }
  0x1f   :  { %703 = vset.pattern.permute.xlu0 %v764_v12 }
  0x20   :  { %206 = vperm.xlu0 %703, %v820_v1  }
  0x22   :  { %699 = vset.pattern.permute.xlu1 %v765_v13 }
  0x23   :  { %141 = vperm.xlu1 %699, %v820_v1  }
  0x24   :  { %706 = vset.pattern.permute.xlu0 %v766_v14 }
  0x25   :  { %314 = vperm.xlu0 %706, %v820_v1  }
  0x27   :  { %701 = vset.pattern.permute.xlu1 %v767_v15 }
  0x28   :  { %238 = vperm.xlu1 %701, %v820_v1  }
  0x29   :  { %707 = vset.pattern.permute.xlu0 %v768_v16 }
  0x2a   :  { %271 = vperm.xlu0 %707, %v820_v1  }
  0x2c   :  { %702 = vset.pattern.permute.xlu1 %v769_v17 }
  0x2d   :  { %249 = vperm.xlu1 %702, %v820_v1  }
  0x2e   :  { %710 = vset.pattern.permute.xlu0 %v770_v18 }
  0x2f   :  { %379 = vperm.xlu0 %710, %v820_v1  }
  0x31   :  { %704 = vset.pattern.permute.xlu1 %v771_v19 }
  0x32   :  { %260 = vperm.xlu1 %704, %v820_v1  }
  0x33   :  { %712 = vset.pattern.permute.xlu0 %v772_v20 }
  0x34   :  { %390 = vperm.xlu0 %712, %v820_v1  }
  0x36   :  { %705 = vset.pattern.permute.xlu1 %v773_v21 }
  0x37   :  { %303 = vperm.xlu1 %705, %v820_v1  }
  0x38   :  { %717 = vset.pattern.permute.xlu0 %v774_v22 }
  0x39   :  { %498 = vperm.xlu0 %717, %v820_v1  }
  0x3b   :  { %708 = vset.pattern.permute.xlu1 %v775_v23 }
  0x3c   :  { %325 = vperm.xlu1 %708, %v820_v1  }
  0x3d   :  { %719 = vset.pattern.permute.xlu0 %v776_v24 }
  0x3e   :  { %466 = vperm.xlu0 %719, %v820_v1  }
  0x40   :  { %709 = vset.pattern.permute.xlu1 %v777_v25 }
  0x41   :  { %368 = vperm.xlu1 %709, %v820_v1  }
  0x42   :  { %724 = vset.pattern.permute.xlu0 %v767_v15 }
  0x45   :  { %711 = vset.pattern.permute.xlu1 %v778_v26  ;;  %v626_v26 = vld [vmem:[%s1083_s0 + $0x9] ss:$0 sm:$0xff] }
  0x46   :  { %336 = vperm.xlu1 %711, %v820_v1  }
  0x4a   :  { %713 = vset.pattern.permute.xlu1 %v779_v27 }
  0x4b   :  { %433 = vperm.xlu1 %713, %v820_v1  }
  0x4f   :  { %714 = vset.pattern.permute.xlu1 %v780_v28  ;;  %v631_v28 = vld [vmem:[%s1083_s0 + $0xd] ss:$0 sm:$0xff] }
  0x50   :  { %444 = vperm.xlu1 %714, %v820_v1  }
  0x54   :  { %715 = vset.pattern.permute.xlu1 %v781_v29 }
  0x55   :  { %401 = vperm.xlu1 %715, %v820_v1  }
  0x59   :  { %716 = vset.pattern.permute.xlu1 %v782_v30 }
  0x5a   :  { %455 = vperm.xlu1 %716, %v820_v1  }
  0x5e   :  { %718 = vset.pattern.permute.xlu1 %v783_v31 }
  0x5f   :  { %509 = vperm.xlu1 %718, %v820_v1  }
  0x63   :  { %720 = vset.pattern.permute.xlu1 %v784_v32  ;;  %v627_v32 = vld [vmem:[%s1083_s0 + $0xa] ss:$0 sm:$0xff] }
  0x64   :  { %520 = vperm.xlu1 %720, %v820_v1  }
  0x68   :  { %721 = vset.pattern.permute.xlu1 %v751_v0 }
  0x76   :  { %v51_v33 = vpop.permute.xlu0 %50 }
  0x77   :  { %v53_v34 = vadd.f32 %v51_v33, %v825_v3  ;;  %v623_v3 = vld [vmem:[%s1083_s0 + $0x7] ss:$0 sm:$0xff] }
  0x7a   :  { %v66_v36 = vpop.permute.xlu0 %65 }
  0x7b   :  { %v68_v37 = vadd.f32 %v66_v36, %v53_v34 }
  0x81   :  { %v28_v35 = vpop.permute.xlu1 %27 }
  0x82   :  { %v34_v59 = vmul.f32 %v615_v54, %v28_v35  ;;  %v632_v35 = vld [vmem:[%s1083_s0 + $0xe] ss:$0 sm:$0xff]  ;;  %v640_v54 = vld [vmem:[%s1083_s0 + $0x14] ss:$0 sm:$0xff] }
  0x85   :  { %v81_v38 = vpop.permute.xlu1 %80 }
  0x86   :  { %v83_v39 = vadd.f32 %v81_v38, %v68_v37  ;;  %v636_v38 = vld [vmem:[%s1083_s0 + $0x11] ss:$0 sm:$0xff] }
  0x88   :  { %285 = vperm.xlu0 %724, %v83_v39   ;;  %90 = vperm.xlu1 %721, %v83_v39  }
  0x89   :  { %v109_v40 = vpop.permute.xlu1 %108 }
  0x8a   :  { %v115_v44 = vmul.f32 %v620_v41, %v109_v40 }
  0x8b   :  { %v41_v47 = vpop.permute.xlu0 %40 }
  0x8c   :  { %725 = vset.pattern.permute.xlu0 %v785_v42  ;;  %722 = vset.pattern.permute.xlu1 %v755_v4  ;;  %v47_v57 = vmul.f32 %v616_v52, %v41_v47  ;;  %v619_v42 = vld [vmem:[%s1084_s1] ss:$0 sm:$0xff]  ;;  %v633_v47 = vld [vmem:[%s1083_s0 + $0xf] ss:$0 sm:$0xff] }
  0x8d   :  { %531 = vperm.xlu0 %725, %v820_v1   ;;  %155 = vperm.xlu1 %722, %v83_v39  }
  0x8e   :  { %v120_v45 = vpop.permute.xlu1 %119  ;;  %v48_v62 = vadd.f32 %v47_v57, %v34_v59 }
  0x8f   :  { %v126_v46 = vmul.f32 %v621_v43, %v120_v45  ;;  %v628_v45 = vld [vmem:[%s1083_s0 + $0xb] ss:$0 sm:$0xff] }
  0x90   :  { %v57_v55 = vpop.permute.xlu0 %56 }
  0x91   :  { %v127_v48 = vadd.f32 %v126_v46, %v115_v44  ;;  %723 = vset.pattern.permute.xlu1 %v761_v9  ;;  %730 = vset.pattern.permute.xlu0 %v774_v22  ;;  %v63_v60 = vmul.f32 %v617_v56, %v57_v55  ;;  %v641_v55 = vld [vmem:[%s1083_s0 + $0x15] ss:$0 sm:$0xff] }
  0x92   :  { %220 = vperm.xlu1 %723, %v83_v39  }
  0x93   :  { %v131_v50 = vpop.permute.xlu1 %130  ;;  %v64_v0 = vadd.f32 %v63_v60, %v48_v62 }
  0x94   :  { %v137_v51 = vmul.f32 %v622_v49, %v131_v50 }
  0x95   :  { %v185_v13 = vpop.permute.xlu0 %184 }
  0x96   :  { %v138_v53 = vadd.f32 %v137_v51, %v127_v48  ;;  %726 = vset.pattern.permute.xlu1 %v773_v21  ;;  %v191_v31 = vmul.f32 %v626_v26, %v185_v13  ;;  %v637_v51 = vld [vmem:[%s1083_s0 + $0x12] ss:$0 sm:$0xff]  ;;  %v645_v13 = vld [vmem:[%s1083_s0 + $0x18] ss:$0 sm:$0xff] }
  0x97   :  { %350 = vperm.xlu1 %726, %v83_v39  }
  0x98   :  { %v174_v58 = vpop.permute.xlu1 %173 }
  0x9a   :  { %v196_v15 = vpop.permute.xlu0 %195 }
  0x9b   :  { %727 = vset.pattern.permute.xlu1 %v777_v25  ;;  %v625_v25 = vld [vmem:[%s1083_s0 + $0x8] ss:$0 sm:$0xff]  ;;  %v202_v41 = vmul.f32 %v627_v32, %v196_v15 }
  0x9c   :  { %415 = vperm.xlu1 %727, %v83_v39   ;;  %v180_v30 = vmul.f32 %v625_v25, %v174_v58 }
  0x9d   :  { %v72_v63 = vpop.permute.xlu1 %71 }
  0x9e   :  { %v78_v1 = vmul.f32 %v618_v61, %v72_v63  ;;  %v192_v40 = vadd.f32 %v191_v31, %v180_v30  ;;  %v624_v61 = vld [vmem:[%s1084_s1 + $0x1] ss:$0 sm:$0xff]  ;;  %v643_v30 = vld [vmem:[%s1083_s0 + $0x17] ss:$0 sm:$0xff] }
  0x9f   :  { %v207_v17 = vpop.permute.xlu0 %206 }
  0xa0   :  { %v79_v2 = vadd.f32 %v78_v1, %v64_v0  ;;  %728 = vset.pattern.permute.xlu1 %v779_v27  ;;  %v630_v27 = vld [vmem:[%s1083_s0 + $0xc] ss:$0 sm:$0xff]  ;;  %v213_v57 = vmul.f32 %v628_v45, %v207_v17  ;;  %v638_v1 = vld [vmem:[%s1083_s0 + $0x13] ss:$0 sm:$0xff] }
  0xa1   :  { %480 = vperm.xlu1 %728, %v83_v39  }
  0xa2   :  { %v142_v4 = vpop.permute.xlu1 %141  ;;  %v94_v50 = vmul.f32 2.0, %v79_v2 }
  0xa3   :  { %v148_v5 = vmul.f32 %v623_v3, %v142_v4 }
  0xa4   :  { %v315_v18 = vpop.permute.xlu0 %314 }
  0xa5   :  { %729 = vset.pattern.permute.xlu1 %v774_v22  ;;  %v900_v6 = vadd.f32 %v148_v5, %v138_v53  ;;  %v321_v46 = vmul.f32 %v636_v38, %v315_v18  ;;  %v203_v53 = vadd.f32 %v202_v41, %v192_v40  ;;  %v650_v38 = vld [vmem:[%s1083_s0 + $0x1c] ss:$0 sm:$0xff] }
  0xa6   :  { %545 = vperm.xlu1 %729, %v83_v39   ;;  %v635_v39 = vld [vmem:[%s1083_s0 + $0x10] ss:$0 sm:$0xff] }
  0xa7   :  { %v239_v7 = vpop.permute.xlu1 %238  ;;  %v159_v5 = vmul.f32 2.0, %v900_v6  ;;  %v646_v6 = vld [vmem:[%s1083_s0 + $0x19] ss:$0 sm:$0xff] }
  0xa8   :  { %v245_v33 = vmul.f32 %v630_v27, %v239_v7  ;;  %v642_v7 = vld [vmem:[%s1083_s0 + $0x16] ss:$0 sm:$0xff] }
  0xa9   :  { %v272_v20 = vpop.permute.xlu0 %271 }
  0xaa   :  { %v278_v59 = vmul.f32 %v633_v47, %v272_v20  ;;  %v629_v20 = vld [vmem:[%s1084_s1 + $0x2] ss:$0 sm:$0xff] }
  0xac   :  { %v250_v8 = vpop.permute.xlu1 %249 }
  0xad   :  { %v256_v34 = vmul.f32 %v631_v28, %v250_v8 }
  0xae   :  { %v380_v22 = vpop.permute.xlu0 %379 }
  0xaf   :  { %v257_v43 = vadd.f32 %v256_v34, %v245_v33  ;;  %v386_v2 = vmul.f32 %v641_v55, %v380_v22  ;;  %v647_v34 = vld [vmem:[%s1083_s0 + $0x1a] ss:$0 sm:$0xff] }
  0xb1   :  { %v261_v9 = vpop.permute.xlu1 %260 }
  0xb2   :  { %v267_v44 = vmul.f32 %v632_v35, %v261_v9  ;;  %v634_v9 = vld [vmem:[%s1084_s1 + $0x3] ss:$0 sm:$0xff] }
  0xb3   :  { %v391_v29 = vpop.permute.xlu0 %390 }
  0xb4   :  { %v268_v58 = vadd.f32 %v267_v44, %v257_v43  ;;  %v397_v25 = vmul.f32 %v642_v7, %v391_v29 }
  0xb6   :  { %v304_v10 = vpop.permute.xlu1 %303 }
  0xb7   :  { %v310_v48 = vmul.f32 %v635_v39, %v304_v10  ;;  %v651_v39 = vld [vmem:[%s1083_s0 + $0x1d] ss:$0 sm:$0xff] }
  0xb8   :  { %v932_v36 = vpop.permute.xlu0 %498 }
  0xb9   :  { %v322_v62 = vadd.f32 %v321_v46, %v310_v48  ;;  %v505_v48 = vmul.f32 %v650_v38, %v932_v36  ;;  %v644_v36 = vld [vmem:[%s1084_s1 + $0x5] ss:$0 sm:$0xff] }
  0xbb   :  { %v326_v11 = vpop.permute.xlu1 %325 }
  0xbc   :  { %v332_v63 = vmul.f32 %v637_v51, %v326_v11  ;;  %v214_v11 = vadd.f32 %v213_v57, %v203_v53  ;;  %v652_v53 = vld [vmem:[%s1083_s0 + $0x1e] ss:$0 sm:$0xff] }
  0xbd   :  { %v960_v56 = vpop.permute.xlu0 %466 }
  0xbe   :  { %v333_v15 = vadd.f32 %v332_v63, %v322_v62 }
  0xc0   :  { %v369_v12 = vpop.permute.xlu1 %368 }
  0xc1   :  { %v375_v0 = vmul.f32 %v640_v54, %v369_v12  ;;  %v279_v12 = vadd.f32 %v278_v59, %v268_v58  ;;  %v653_v59 = vld [vmem:[%s1083_s0 + $0x1f] ss:$0 sm:$0xff] }
  0xc3   :  { %v387_v22 = vadd.f32 %v386_v2, %v375_v0  ;;  %v289_v33 = vmul.f32 2.0, %v279_v12 }
  0xc5   :  { %v902_v14 = vpop.permute.xlu1 %336 }
  0xc6   :  { %v343_v17 = vmul.f32 %v638_v1, %v902_v14  ;;  %v224_v14 = vmul.f32 2.0, %v214_v11 }
  0xc8   :  { %v344_v29 = vadd.f32 %v343_v17, %v333_v15 }
  0xca   :  { %v904_v16 = vpop.permute.xlu1 %433  ;;  %v354_v47 = vmul.f32 2.0, %v344_v29 }
  0xcb   :  { %v440_v27 = vmul.f32 %v645_v13, %v904_v16  ;;  %v398_v16 = vadd.f32 %v397_v25, %v387_v22 }
  0xcf   :  { %v906_v19 = vpop.permute.xlu1 %444 }
  0xd0   :  { %v451_v28 = vmul.f32 %v646_v6, %v906_v19 }
  0xd2   :  { %v452_v43 = vadd.f32 %v451_v28, %v440_v27  ;;  %v654_v28 = vld [vmem:[%s1084_s1 + $0x7] ss:$0 sm:$0xff] }
  0xd4   :  { %v908_v21 = vpop.permute.xlu1 %401 }
  0xd5   :  { %v408_v19 = vmul.f32 %v643_v30, %v908_v21  ;;  %v648_v21 = vld [vmem:[%s1083_s0 + $0x1b] ss:$0 sm:$0xff] }
  0xd6   :  { %v473_v55 = vmul.f32 %v648_v21, %v960_v56 }
  0xd9   :  { %v910_v23 = vpop.permute.xlu1 %455 }
  0xda   :  { %v462_v44 = vmul.f32 %v647_v34, %v910_v23 }
  0xdc   :  { %v463_v54 = vadd.f32 %v462_v44, %v452_v43 }
  0xde   :  { %v912_v24 = vpop.permute.xlu1 %509  ;;  %v474_v2 = vadd.f32 %v473_v55, %v463_v54 }
  0xe0   :  { %v484_v15 = vmul.f32 2.0, %v474_v2 }
  0xe3   :  { %v934_v37 = vpop.permute.xlu1 %520 }
 0x107   :  { %v91_v49 = vpop.permute.xlu1 %90  ;;  %v286_v8 = vpop.permute.xlu0 %285 }
 0x108   :  { %v93_v52 = vadd.f32 %v619_v42, %v91_v49  ;;  %v288_v26 = vadd.f32 %v634_v9, %v286_v8  ;;  %v639_v42 = vld [vmem:[%s1084_s1 + $0x4] ss:$0 sm:$0xff]  ;;  %v516_v49 = vmul.f32 %v651_v39, %v912_v24 }
 0x10a   :  { %v95_v60 = vsub.f32 %v93_v52, %v94_v50  ;;  %v290_v40 = vsub.f32 %v288_v26, %v289_v33  ;;  %v409_v52 = vadd.f32 %v408_v19, %v398_v16 }
 0x10c   :  { %v968_v3 = vmax.f32 %v95_v60, 0.0  ;;  %v156_v4 = vpop.permute.xlu1 %155  ;;  %v1020_v23 = vmax.f32 %v290_v40, 0.0  ;;  %v532_v58 = vpop.permute.xlu0 %531  ;;  %v517_v60 = vadd.f32 %v516_v49, %v505_v48  ;;  %v419_v0 = vmul.f32 2.0, %v409_v52 }
 0x10d   :  { %v158_v10 = vadd.f32 %v624_v61, %v156_v4  ;;  %v527_v61 = vmul.f32 %v652_v53, %v934_v37  ;;  %v538_v4 = vmul.f32 %v653_v59, %v532_v58  ;;  %v649_v37 = vld [vmem:[%s1084_s1 + $0x6] ss:$0 sm:$0xff] }
 0x10e   :  { %731 = vrsqrt.f32 %v968_v3  ;;  %vm99_vm0 = vcmp.eq.f32.partialorder %v968_v3, inf  ;;  %vm101_vm2 = vcmp.eq.f32.partialorder %v968_v3, 0.0  ;;  %vm294_vm6 = vcmp.eq.f32.partialorder %v1020_v23, inf }
 0x10f   :  { %v160_v18 = vsub.f32 %v158_v10, %v159_v5  ;;  %v528_v9 = vadd.f32 %v527_v61, %v517_v60  ;;  %v102_v10 = vand.u32 2147483648, %v968_v3  ;;  %v297_v21 = vand.u32 2147483648, %v1020_v23 }
 0x110   :  { %vm296_vm8 = vcmp.eq.f32.partialorder %v1020_v23, 0.0 }
 0x111   :  { %v993_v31 = vmax.f32 %v160_v18, 0.0  ;;  %v221_v32 = vpop.permute.xlu1 %220  ;;  %v539_v25 = vadd.f32 %v538_v4, %v528_v9 }
 0x112   :  { %v223_v35 = vadd.f32 %v629_v20, %v221_v32 }
 0x113   :  { %733 = vrsqrt.f32 %v993_v31  ;;  %vm164_vm1 = vcmp.eq.f32.partialorder %v993_v31, inf  ;;  %v167_v11 = vand.u32 2147483648, %v993_v31  ;;  %vm166_vm3 = vcmp.eq.f32.partialorder %v993_v31, 0.0 }
 0x114   :  { %v225_v41 = vsub.f32 %v223_v35, %v224_v14  ;;  %v549_v34 = vmul.f32 2.0, %v539_v25 }
 0x116   :  { %v1013_v45 = vmax.f32 %v225_v41, 0.0  ;;  %v351_v46 = vpop.permute.xlu1 %350 }
 0x117   :  { %v353_v50 = vadd.f32 %v639_v42, %v351_v46 }
 0x118   :  { %v732_v51 = vpop.eup %731  ;;  %735 = vrsqrt.f32 %v1013_v45  ;;  %vm229_vm4 = vcmp.eq.f32.partialorder %v1013_v45, inf  ;;  %vm231_vm5 = vcmp.eq.f32.partialorder %v1013_v45, 0.0 }
 0x119   :  { %v355_v57 = vsub.f32 %v353_v50, %v354_v47  ;;  %v98_v24 = vmul.f32 %v732_v51, %v968_v3  ;;  %737 = vrsqrt.f32 %v1020_v23 }
 0x11b   :  { %v1032_v62 = vmax.f32 %v355_v57, 0.0  ;;  %v416_v63 = vpop.permute.xlu1 %415  ;;  %v100_v8 = vsel %vm99_vm0, %v968_v3, %v98_v24  ;;  %v232_v3 = vand.u32 2147483648, %v1013_v45  ;;  %vm561_vm0 = vcmask 130048  }
 0x11c   :  { %v418_v56 = vadd.f32 %v644_v36, %v416_v63  ;;  %v103_v18 = vsel %vm101_vm2, %v102_v10, %v100_v8 }
 0x11d   :  { %v734_v1 = vpop.eup %733  ;;  %739 = vrsqrt.f32 %v1032_v62  ;;  %vm359_vm7 = vcmp.eq.f32.partialorder %v1032_v62, inf  ;;  %v362_v47 = vand.u32 2147483648, %v1032_v62  ;;  %vm361_vm10 = vcmp.eq.f32.partialorder %v1032_v62, 0.0 }
 0x11e   :  { %v163_v5 = vmul.f32 %v734_v1, %v993_v31  ;;  %v420_v7 = vsub.f32 %v418_v56, %v419_v0  ;;  %v22_v1 = vld [vmem:[%s1085_s3] sm:$0xff] }
 0x11f   :  { %v582_v4 = vsel %vm561_vm0, %v22_v1, -inf }
 0x120   :  { %v421_v12 = vmax.f32 %v420_v7, 0.0  ;;  %v481_v13 = vpop.permute.xlu1 %480  ;;  %v165_v6 = vsel %vm164_vm1, %v993_v31, %v163_v5  ;;  %v19_v5 = vlaneseq }
 0x121   :  { %v483_v17 = vadd.f32 %v649_v37, %v481_v13  ;;  %v168_v20 = vsel %vm166_vm3, %v167_v11, %v165_v6 }
 0x122   :  { %v736_v22 = vpop.eup %735  ;;  %741 = vrsqrt.f32 %v421_v12  ;;  %v169_v26 = vadd.f32 %v168_v20, %v103_v18  ;;  %vm424_vm9 = vcmp.eq.f32.partialorder %v421_v12, inf  ;;  %v427_v52 = vand.u32 2147483648, %v421_v12 }
 0x123   :  { %v485_v27 = vsub.f32 %v483_v17, %v484_v15  ;;  %v228_v30 = vmul.f32 %v736_v22, %v1013_v45  ;;  %v738_v33 = vpop.eup %737  ;;  %vm426_vm11 = vcmp.eq.f32.partialorder %v421_v12, 0.0  ;;  %v20_v7 = vand.u32 127, %v19_v5 }
 0x124   :  { %v293_v39 = vmul.f32 %v738_v33, %v1020_v23 }
 0x125   :  { %v486_v31 = vmax.f32 %v485_v27, 0.0  ;;  %v546_v32 = vpop.permute.xlu1 %545  ;;  %v230_v14 = vsel %vm229_vm4, %v1013_v45, %v228_v30  ;;  %vm600_vm3 = vcmp.eq.s32.totalorder %v20_v7, 0 }
 0x126   :  { %v548_v35 = vadd.f32 %v654_v28, %v546_v32  ;;  %v233_v29 = vsel %vm231_vm5, %v232_v3, %v230_v14  ;;  %v295_v43 = vsel %vm294_vm6, %v1020_v23, %v293_v39  ;;  %vm604_vm5 = vcmask 7168  }
 0x127   :  { %743 = vrsqrt.f32 %v486_v31  ;;  %v234_v16 = vadd.f32 %v233_v29, %v169_v26  ;;  %v740_v19 = vpop.eup %739  ;;  %v298_v46 = vsel %vm296_vm8, %v297_v21, %v295_v43  ;;  %vm489_vm12 = vcmp.eq.f32.partialorder %v486_v31, inf }
 0x128   :  { %v550_v38 = vsub.f32 %v548_v35, %v549_v34  ;;  %v358_v41 = vmul.f32 %v740_v19, %v1032_v62  ;;  %v492_v57 = vand.u32 2147483648, %v486_v31  ;;  %vm491_vm13 = vcmp.eq.f32.partialorder %v486_v31, 0.0 }
 0x129   :  { %v299_v49 = vadd.f32 %v298_v46, %v234_v16 }
 0x12a   :  { %v551_v40 = vmax.f32 %v550_v38, 0.0  ;;  %v360_v45 = vsel %vm359_vm7, %v1032_v62, %v358_v41 }
 0x12b   :  { %v363_v51 = vsel %vm361_vm10, %v362_v47, %v360_v45 }
 0x12c   :  { %v742_v42 = vpop.eup %741  ;;  %745 = vrsqrt.f32 %v551_v40  ;;  %v364_v23 = vadd.f32 %v363_v51, %v299_v49  ;;  %vm554_vm14 = vcmp.eq.f32.partialorder %v551_v40, inf  ;;  %v557_v60 = vand.u32 2147483648, %v551_v40 }
 0x12d   :  { %v423_v44 = vmul.f32 %v742_v42, %v421_v12  ;;  %vm556_vm15 = vcmp.eq.f32.partialorder %v551_v40, 0.0 }
 0x12f   :  { %v425_v50 = vsel %vm424_vm9, %v421_v12, %v423_v44 }
 0x130   :  { %v428_v54 = vsel %vm426_vm11, %v427_v52, %v425_v50 }
 0x131   :  { %v744_v48 = vpop.eup %743  ;;  %v429_v58 = vadd.f32 %v428_v54, %v364_v23 }
 0x132   :  { %v488_v53 = vmul.f32 %v744_v48, %v486_v31 }
 0x134   :  { %v490_v55 = vsel %vm489_vm12, %v486_v31, %v488_v53 }
 0x135   :  { %v493_v24 = vsel %vm491_vm13, %v492_v57, %v490_v55 }
 0x136   :  { %v746_v36 = vpop.eup %745  ;;  %v494_v61 = vadd.f32 %v493_v24, %v429_v58 }
 0x137   :  { %v553_v59 = vmul.f32 %v746_v36, %v551_v40 }
 0x139   :  { %v555_v63 = vsel %vm554_vm14, %v551_v40, %v553_v59 }
 0x13a   :  { %v558_v62 = vsel %vm556_vm15, %v557_v60, %v555_v63 }
 0x13b   :  { %v559_v0 = vadd.f32 %v558_v62, %v494_v61 }
 0x13d   :  { %v560_v56 = vmul.f32 0.125, %v559_v0 }
 0x13f   :  { %v562_v2 = vsel %vm561_vm0, %v560_v56, inf }
 0x140   :  { %563 = vmin.xlane.f32.xlu0 %v562_v2 }
 0x144   :  { %583 = vmax.xlane.f32.xlu0 %v582_v4 }
 0x1cd   :  { %v564_v37 = vpop.xlane.xlu0 %563 }
 0x1ce   :  { %vm565_vm1 = vcmp.le.f32.partialorder %v560_v56, %v564_v37 }
 0x1cf   :  { %v566_v8 = vsel %vm565_vm1, %v20_v7, 16 }
 0x1d0   :  { %v567_v9 = vsel %vm561_vm0, %v566_v8, 2147483647 }
 0x1d1   :  { %v569_v10 = vshra.s32 %v567_v9, 16  ;;  %v584_v11 = vpop.xlane.xlu0 %583  ;;  %v568_v18 = vand.u32 65535, %v567_v9 }
 0x1d2   :  { %v585_v12 = vsub.f32 %v22_v1, %v584_v11 }
 0x1d3   :  { %v571_v13 = vcvt.s32.f32 %v569_v10  ;;  %v570_v22 = vcvt.s32.f32 %v568_v18 }
 0x1d4   :  { %v586_v6 = vmul.f32 1.442695, %v585_v12 }
 0x1d5   :  { %572 = vmin.xlane.f32.xlu1 %v571_v13 }
 0x1d6   :  { %747 = vpow2.f32 %v586_v6 }
 0x1e0   :  { %v748_v15 = vpop.eup %747 }
 0x1e1   :  { %v588_v17 = vsel %vm561_vm0, %v748_v15, 0.0 }
 0x1e2   :  { %589 = vadd.xlane.f32.xlu1 %v588_v17 }
 0x262   :  { %v573_v20 = vpop.xlane.xlu1 %572 }
 0x263   :  { %vm574_vm2 = vcmp.eq.f32.partialorder %v571_v13, %v573_v20  ;;  %v579_v26 = vcvt.f32.s32 %v573_v20 }
 0x264   :  { %v575_v25 = vsel %vm574_vm2, %v570_v22, inf }
 0x265   :  { %576 = vmin.xlane.f32.xlu0 %v575_v25  ;;  %v580_v28 = vshll.u32 %v579_v26, 16 }
 0x26f   :  { %v590_v34 = vpop.xlane.xlu1 %589 }
 0x270   :  { %749 = vlog2.f32 %v590_v34 }
 0x27a   :  { %v750_v35 = vpop.eup %749 }
 0x27b   :  { %v592_v29 = vmul.f32 0.6931472, %v750_v35 }
 0x27d   :  { %v593_v16 = vadd.f32 %v592_v29, %v584_v11 }
 0x2f2   :  { %v577_v27 = vpop.xlane.xlu0 %576 }
 0x2f3   :  { %v578_v30 = vcvt.f32.s32 %v577_v27 }
 0x2f5   :  { %v581_v3 = vadd.s32 %v580_v28, %v578_v30 }
 0x2f7   :  { %v602_v31 = vcvt.s32.f32 %v581_v3  ;;  %vm594_vm4 = vcmp.eq.s32.totalorder %v20_v7, %v581_v3 }
 0x2f8   :  { %v595_v32 = vsel %vm594_vm4, %v22_v1, 0.0 }
 0x2f9   :  { %v596_v14 = vsel %vm561_vm0, %v595_v32, 0.0  ;;  %v603_v33 = vsel %vm600_vm3, %v602_v31, 0.0 }
 0x2fa   :  { %597 = vadd.xlane.f32.xlu0 %v596_v14  ;;  %606 = vst.msk [vmem:[%s1086_s5] sm:$0xff] %vm604_vm5, %v603_v33 }
 0x387   :  { %v598_v19 = vpop.xlane.xlu0 %597 }
 0x388   :  { %v599_v38 = vsub.f32 %v593_v16, %v598_v19 }
 0x38a   :  { %v601_v39 = vsel %vm600_vm3, %v599_v38, 0.0 }
 0x38b   :  { %605 = vst.msk [vmem:[%s1087_s4] sm:$0xff] %vm604_vm5, %v601_v39 }

</bundles_post_ra>
